<compile_context>
chip_gen: v5e
topology: v5e:2x2
jax: 0.10.0
libtpu: 0.0.40
codegen_flags: <defaults>
</compile_context>

<pallas_src>
import functools

import jax
import jax.numpy as jnp
from jax import lax
from jax.experimental import pallas as pl
from jax.experimental.pallas import tpu as pltpu


_MIB = 1024 * 1024
_VMEM_FIT_BUDGET = 40 * _MIB     # working set must fit here (v7x: 64 MiB physical)
_VMEM_REQUEST_CAP = 48 * _MIB    # never request more scoped VMEM than this


def _svr_rbf_kernel(x_ref, sv_ref, dual_ref, nsvsq_ref, o_ref, *, gamma, intercept):
    # x_ref:     (bt, D)       flattened input tile (pipelined over the batch)
    # sv_ref:    (M, D)        support vectors (grid-invariant)
    # dual_ref:  (1, M)        dual coefficients
    # nsvsq_ref: (1, M)        precomputed -gamma * ||sv_m||^2
    # o_ref:     (1, 1, bt)    lane-dense decision values for this tile
    x = x_ref[...].astype(jnp.float32)                     # (bt, D)
    sv = sv_ref[...].astype(jnp.float32)                   # (M, D)
    dual = dual_ref[...].astype(jnp.float32)               # (1, M)
    neg_g_sv_sq = nsvsq_ref[...].astype(jnp.float32)       # (1, M)

    # cross[b, m] = <x_b, sv_m> on the MXU; contract dim 1 with dim 1 so the
    # (M, D) tile is consumed natively (no materialized sv.T relayout).
    # bf16 operands would halve HBM traffic but exceed the 1e-4 tolerance.
    cross = lax.dot_general(
        x, sv, (((1,), (1,)), ((), ())),
        preferred_element_type=jnp.float32)                # (bt, M)

    x_sq = jnp.sum(x * x, axis=-1, keepdims=True)          # (bt, 1)

    # -gamma * ||x - sv||^2 = 2g*cross - g*||x||^2 - g*||sv||^2, clamped <= 0.
    # The clamp guards both float cancellation and the unspecified values read
    # in the ragged last batch block (no jnp.pad): garbage stays bounded and
    # confined to its own (sliced-off) rows.
    arg = (2.0 * gamma) * cross + (-gamma) * x_sq + neg_g_sv_sq
    k = jnp.exp(jnp.minimum(arg, 0.0))                     # (bt, M) on EUP

    # Weighted sum over support vectors as a (1,M)x(bt,M) contraction: lands on
    # an otherwise idle MXU slot and yields a lane-dense (1, bt) output row.
    out_row = lax.dot_general(
        dual, k, (((1,), (1,)), ((), ())),
        preferred_element_type=jnp.float32)                # (1, bt)
    o_ref[...] = (out_row + jnp.float32(intercept)).reshape(o_ref.shape)


def _round_up(n, m):
    return ((n + m - 1) // m) * m


def _vmem_bytes(b_tile, D, M):
    """Conservative VMEM working-set estimate (assumes 2 buffers for sv)."""
    x_dbl = 2 * b_tile * D * 4          # double-buffered x tiles
    sv = 2 * M * D * 4                  # support vectors (worst case: 2 buffers)
    consts = 2 * 2 * M * 4              # dual_coef + (-gamma * ||sv||^2)
    interm = 4 * b_tile * M * 4         # cross / arg / exp / weighted f32 lives
    out = 2 * b_tile * 4                # double-buffered (1, 1, b_tile) output
    return x_dbl + sv + consts + interm + out


def _pick_b_tile(B, D, M, max_b_tile):
    if B >= 256:
        b_tile = min(max_b_tile, _round_up(B, 256))   # MXU-row aligned tiles
    else:
        b_tile = _round_up(B, 8)                      # single sublane-aligned tile
    # Shrink until the working set fits comfortably under v7x's 64 MiB VMEM.
    while b_tile > 8 and _vmem_bytes(b_tile, D, M) > _VMEM_FIT_BUDGET:
        b_tile = max(8, _round_up(b_tile // 2, 8))
    return b_tile


def svr_predict(x_flat, support_vectors, dual_coef, neg_gamma_sv_sq,
                intercept, gamma, *, max_b_tile=1024):
    """SVR.predict (rbf kernel) via a batch-tiled Pallas kernel."""
    B, D = x_flat.shape
    M = support_vectors.shape[0]

    b_tile = _pick_b_tile(B, D, M, max_b_tile)
    num_tiles = pl.cdiv(B, b_tile)        # ragged last block: no jnp.pad HBM copy
    vmem_limit = int(min(_VMEM_REQUEST_CAP,
                         max(_vmem_bytes(b_tile, D, M) + 6 * _MIB, 16 * _MIB)))

    def build(single_buffer_constants):
        kernel = functools.partial(
            _svr_rbf_kernel, gamma=float(gamma), intercept=float(intercept))
        const_kw = (dict(pipeline_mode=pl.Buffered(1))
                    if single_buffer_constants else {})
        return pl.pallas_call(
            kernel,
            out_shape=jax.ShapeDtypeStruct((num_tiles, 1, b_tile), jnp.float32),
            grid=(num_tiles,),
            in_specs=[
                pl.BlockSpec((b_tile, D), lambda i: (i, 0)),          # pipelined x
                pl.BlockSpec((M, D), lambda i: (0, 0), **const_kw),   # support vecs
                pl.BlockSpec((1, M), lambda i: (0, 0), **const_kw),   # dual coefs
                pl.BlockSpec((1, M), lambda i: (0, 0), **const_kw),   # -g*||sv||^2
            ],
            out_specs=pl.BlockSpec((1, 1, b_tile), lambda i: (i, 0, 0)),
            compiler_params=pltpu.CompilerParams(
                dimension_semantics=("parallel",),   # megacore split over batch
                vmem_limit_bytes=vmem_limit,         # buffer-derived, <= 48 MiB
            ),
        )

    args = (x_flat.astype(jnp.float32), support_vectors, dual_coef, neg_gamma_sv_sq)
    try:
        # Grid-invariant inputs single-buffered: halves their VMEM footprint
        # (matters most inside v7x's 64 MiB budget).
        out = build(single_buffer_constants=True)(*args)
    except Exception:
        # Fallback for Pallas versions without Buffered(1) support on
        # pallas_call inputs: default double-buffered constants (still correct).
        out = build(single_buffer_constants=False)(*args)

    # (num_tiles, 1, b_tile) lane-dense slab -> (B,); drops the ragged tail rows.
    return out.reshape(-1)[:B]


class SVRRegressor:
    """JAX/Pallas equivalent of svr_regressor with a fitted synthetic RBF SVR."""

    def __init__(self, key, n_features, n_support=128, C=1.0, epsilon=0.1):
        k_sv, k_dual, k_b = jax.random.split(key, 3)
        # Deterministic synthetic "fitted" SVR parameters (no checkpoint loading).
        self.support_vectors = jax.random.normal(
            k_sv, (n_support, n_features), dtype=jnp.float32)
        # dual_coef in [-C, C], shape (1, M) as in sklearn.
        self.dual_coef = (
            jax.random.uniform(k_dual, (1, n_support), dtype=jnp.float32) * 2.0 - 1.0
        ) * C
        self.intercept = float(jax.random.normal(k_b, (), dtype=jnp.float32))
        # gamma = 'scale' default: 1 / (n_features * X.var()); variance ~1 here.
        self.gamma = 1.0 / float(n_features)
        self.epsilon = epsilon  # epsilon only affects training, not predict
        # Hoisted constant: -gamma * ||sv_m||^2, shape (1, M).
        self.neg_gamma_sv_sq = (
            -self.gamma
            * jnp.sum(self.support_vectors * self.support_vectors, axis=-1)[None, :]
        ).astype(jnp.float32)

    def __call__(self, x):
        # x: (B, C, H, W)  ->  flatten exactly like torch .view(B, -1)
        x_flat = x.reshape(x.shape[0], -1).astype(jnp.float32)
        return svr_predict(
            x_flat,
            self.support_vectors,
            self.dual_coef,
            self.neg_gamma_sv_sq,
            self.intercept,
            self.gamma,
        )


if __name__ == "__main__":
    key = jax.random.PRNGKey(0)
    k_x, k_model = jax.random.split(key)

    # Small shapes consistent with the module: batch=2, channels=4, spatial=16.
    B, C, H, W = 2, 4, 16, 16
    x = jax.random.normal(k_x, (B, C, H, W), dtype=jnp.float32)

    model = SVRRegressor(k_model, n_features=C * H * W, n_support=128,
                         C=1.0, epsilon=0.1)

    out = model(x)
    out = jax.block_until_ready(out)

    # Pure-JAX reference check of the same math.
    xf = x.reshape(B, -1)
    d2 = (
        jnp.sum(xf * xf, -1, keepdims=True)
        + jnp.sum(model.support_vectors * model.support_vectors, -1)[None, :]
        - 2.0 * xf @ model.support_vectors.T
    )
    d2 = jnp.maximum(d2, 0.0)
    ref = jnp.exp(-model.gamma * d2) @ model.dual_coef[0] + model.intercept
    assert out.shape == (B,)
    assert jnp.allclose(out, ref, atol=1e-4), (out, ref)

    print("KERNEL_OK")
</pallas_src>

<mosaic_0001>
module attributes {stable_mosaic.version = 11 : i64} {
  func.func @_svr_rbf_kernel(%arg0: i32, %arg1: memref<8x1024xf32, #tpu.memory_space<vmem>>, %arg2: memref<128x1024xf32, #tpu.memory_space<vmem>>, %arg3: memref<1x128xf32, #tpu.memory_space<vmem>>, %arg4: memref<1x128xf32, #tpu.memory_space<vmem>>, %arg5: memref<1x1x8xf32, #tpu.memory_space<vmem>>) attributes {dimension_semantics = [#tpu.dimension_semantics<parallel>], iteration_bounds = array<i64: 1>, scalar_prefetch = 0 : i64, scratch_operands = 0 : i64, tpu.core_type = #tpu.core_type<tc>, window_params = [{transform_indices = @transform_0, window_bounds = array<i64: 8, 1024>}, {pipeline_mode = #tpu.pipeline_mode<synchronous>, transform_indices = @transform_1, window_bounds = array<i64: 128, 1024>}, {pipeline_mode = #tpu.pipeline_mode<synchronous>, transform_indices = @transform_2, window_bounds = array<i64: 1, 128>}, {pipeline_mode = #tpu.pipeline_mode<synchronous>, transform_indices = @transform_3, window_bounds = array<i64: 1, 128>}, {transform_indices = @transform_4, window_bounds = array<i64: 1, 1, 8>}]} {
    %c0 = arith.constant 0 : index
    %c0_0 = arith.constant 0 : index
    %0 = vector.load %arg1[%c0, %c0_0] : memref<8x1024xf32, #tpu.memory_space<vmem>>, vector<8x1024xf32>
    %c0_1 = arith.constant 0 : index
    %c0_2 = arith.constant 0 : index
    %1 = vector.load %arg2[%c0_1, %c0_2] : memref<128x1024xf32, #tpu.memory_space<vmem>>, vector<128x1024xf32>
    %c0_3 = arith.constant 0 : index
    %c0_4 = arith.constant 0 : index
    %2 = vector.load %arg3[%c0_3, %c0_4] : memref<1x128xf32, #tpu.memory_space<vmem>>, vector<1x128xf32>
    %c0_5 = arith.constant 0 : index
    %c0_6 = arith.constant 0 : index
    %3 = vector.load %arg4[%c0_5, %c0_6] : memref<1x128xf32, #tpu.memory_space<vmem>>, vector<1x128xf32>
    %cst = arith.constant dense<0.000000e+00> : vector<8x128xf32>
    %4 = tpu.matmul %0, %1, %cst {dimension_numbers = #tpu.dot_dimension_numbers<[1], [1], [0], [0], [0, 0, 1, 0], [], []>} : vector<8x1024xf32>, vector<128x1024xf32>, vector<8x128xf32> -> vector<8x128xf32>
    %5 = arith.mulf %0, %0 : vector<8x1024xf32>
    %cst_7 = arith.constant dense<0.000000e+00> : vector<8xf32>
    %6 = vector.multi_reduction <add>, %5, %cst_7 [1] : vector<8x1024xf32> to vector<8xf32>
    %7 = vector.shape_cast %6 : vector<8xf32> to vector<8x1xf32>
    %cst_8 = arith.constant 0.001953125 : f32
    %8 = vector.broadcast %cst_8 : f32 to vector<8x128xf32>
    %9 = arith.mulf %8, %4 : vector<8x128xf32>
    %cst_9 = arith.constant -9.765625E-4 : f32
    %10 = vector.broadcast %cst_9 : f32 to vector<8x1xf32>
    %11 = arith.mulf %10, %7 : vector<8x1xf32>
    %12 = vector.broadcast %11 : vector<8x1xf32> to vector<8x128xf32>
    %13 = arith.addf %9, %12 : vector<8x128xf32>
    %14 = vector.broadcast %3 : vector<1x128xf32> to vector<8x128xf32>
    %15 = arith.addf %13, %14 : vector<8x128xf32>
    %cst_10 = arith.constant 0.000000e+00 : f32
    %16 = vector.broadcast %cst_10 : f32 to vector<8x128xf32>
    %17 = arith.minimumf %15, %16 : vector<8x128xf32>
    %18 = math.exp %17 : vector<8x128xf32>
    %cst_11 = arith.constant dense<0.000000e+00> : vector<1x8xf32>
    %19 = tpu.matmul %2, %18, %cst_11 {dimension_numbers = #tpu.dot_dimension_numbers<[1], [1], [0], [0], [0, 0, 1, 0], [], []>} : vector<1x128xf32>, vector<8x128xf32>, vector<1x8xf32> -> vector<1x8xf32>
    %cst_12 = arith.constant 0.67965436 : f32
    %20 = vector.broadcast %cst_12 : f32 to vector<1x8xf32>
    %21 = arith.addf %19, %20 : vector<1x8xf32>
    %22 = vector.shape_cast %21 : vector<1x8xf32> to vector<1x1x8xf32>
    %c0_13 = arith.constant 0 : index
    %c0_14 = arith.constant 0 : index
    %c0_15 = arith.constant 0 : index
    %23 = vector.load %arg5[%c0_13, %c0_14, %c0_15] : memref<1x1x8xf32, #tpu.memory_space<vmem>>, vector<1x1x8xf32>
    tpu.vector_store %arg5[%c0_13, %c0_14, %c0_15], %22 {strides = array<i32>} : memref<1x1x8xf32, #tpu.memory_space<vmem>>, vector<1x1x8xf32>,
    return
  }
  func.func @transform_0(%arg0: i32) -> (i32, i32) {
    %c0_i32 = arith.constant 0 : i32
    %c0_i32_0 = arith.constant 0 : i32
    return %arg0, %c0_i32 : i32, i32
  }
  func.func @transform_1(%arg0: i32) -> (i32, i32) {
    %c0_i32 = arith.constant 0 : i32
    %c0_i32_0 = arith.constant 0 : i32
    %c0_i32_1 = arith.constant 0 : i32
    return %c0_i32, %c0_i32_0 : i32, i32
  }
  func.func @transform_2(%arg0: i32) -> (i32, i32) {
    %c0_i32 = arith.constant 0 : i32
    %c0_i32_0 = arith.constant 0 : i32
    %c0_i32_1 = arith.constant 0 : i32
    return %c0_i32, %c0_i32_0 : i32, i32
  }
  func.func @transform_3(%arg0: i32) -> (i32, i32) {
    %c0_i32 = arith.constant 0 : i32
    %c0_i32_0 = arith.constant 0 : i32
    %c0_i32_1 = arith.constant 0 : i32
    return %c0_i32, %c0_i32_0 : i32, i32
  }
  func.func @transform_4(%arg0: i32) -> (i32, i32, i32) {
    %c0_i32 = arith.constant 0 : i32
    %c0_i32_0 = arith.constant 0 : i32
    %c0_i32_1 = arith.constant 0 : i32
    return %arg0, %c0_i32, %c0_i32_0 : i32, i32, i32
  }
}

module attributes {stable_mosaic.version = 11 : i64} {
  func.func @_svr_rbf_kernel(%arg0: i32, %arg1: memref<8x1024xf32, #tpu.memory_space<vmem>>, %arg2: memref<128x1024xf32, #tpu.memory_space<vmem>>, %arg3: memref<1x128xf32, #tpu.memory_space<vmem>>, %arg4: memref<1x128xf32, #tpu.memory_space<vmem>>, %arg5: memref<1x1x8xf32, #tpu.memory_space<vmem>>) attributes {dimension_semantics = [#tpu.dimension_semantics<parallel>], iteration_bounds = array<i64: 1>, scalar_prefetch = 0 : i64, scratch_operands = 0 : i64, tpu.core_type = #tpu.core_type<tc>, window_params = [{transform_indices = @transform_0, window_bounds = array<i64: 8, 1024>}, {pipeline_mode = #tpu.pipeline_mode<synchronous>, transform_indices = @transform_1, window_bounds = array<i64: 128, 1024>}, {pipeline_mode = #tpu.pipeline_mode<synchronous>, transform_indices = @transform_2, window_bounds = array<i64: 1, 128>}, {pipeline_mode = #tpu.pipeline_mode<synchronous>, transform_indices = @transform_3, window_bounds = array<i64: 1, 128>}, {transform_indices = @transform_4, window_bounds = array<i64: 1, 1, 8>}]} {
    %c0 = arith.constant 0 : index
    %c0_0 = arith.constant 0 : index
    %0 = vector.load %arg1[%c0, %c0_0] : memref<8x1024xf32, #tpu.memory_space<vmem>>, vector<8x1024xf32>
    %c0_1 = arith.constant 0 : index
    %c0_2 = arith.constant 0 : index
    %1 = vector.load %arg2[%c0_1, %c0_2] : memref<128x1024xf32, #tpu.memory_space<vmem>>, vector<128x1024xf32>
    %c0_3 = arith.constant 0 : index
    %c0_4 = arith.constant 0 : index
    %2 = vector.load %arg3[%c0_3, %c0_4] : memref<1x128xf32, #tpu.memory_space<vmem>>, vector<1x128xf32>
    %c0_5 = arith.constant 0 : index
    %c0_6 = arith.constant 0 : index
    %3 = vector.load %arg4[%c0_5, %c0_6] : memref<1x128xf32, #tpu.memory_space<vmem>>, vector<1x128xf32>
    %cst = arith.constant dense<0.000000e+00> : vector<8x128xf32>
    %4 = tpu.matmul %0, %1, %cst {dimension_numbers = #tpu.dot_dimension_numbers<[1], [1], [0], [0], [0, 0, 1, 0], [], []>} : vector<8x1024xf32>, vector<128x1024xf32>, vector<8x128xf32> -> vector<8x128xf32>
    %5 = arith.mulf %0, %0 : vector<8x1024xf32>
    %cst_7 = arith.constant dense<0.000000e+00> : vector<8xf32>
    %6 = vector.multi_reduction <add>, %5, %cst_7 [1] : vector<8x1024xf32> to vector<8xf32>
    %7 = vector.shape_cast %6 : vector<8xf32> to vector<8x1xf32>
    %cst_8 = arith.constant 0.001953125 : f32
    %8 = vector.broadcast %cst_8 : f32 to vector<8x128xf32>
    %9 = arith.mulf %8, %4 : vector<8x128xf32>
    %cst_9 = arith.constant -9.765625E-4 : f32
    %10 = vector.broadcast %cst_9 : f32 to vector<8x1xf32>
    %11 = arith.mulf %10, %7 : vector<8x1xf32>
    %12 = vector.broadcast %11 : vector<8x1xf32> to vector<8x128xf32>
    %13 = arith.addf %9, %12 : vector<8x128xf32>
    %14 = vector.broadcast %3 : vector<1x128xf32> to vector<8x128xf32>
    %15 = arith.addf %13, %14 : vector<8x128xf32>
    %cst_10 = arith.constant 0.000000e+00 : f32
    %16 = vector.broadcast %cst_10 : f32 to vector<8x128xf32>
    %17 = arith.minimumf %15, %16 : vector<8x128xf32>
    %18 = math.exp %17 : vector<8x128xf32>
    %cst_11 = arith.constant dense<0.000000e+00> : vector<1x8xf32>
    %19 = tpu.matmul %2, %18, %cst_11 {dimension_numbers = #tpu.dot_dimension_numbers<[1], [1], [0], [0], [0, 0, 1, 0], [], []>} : vector<1x128xf32>, vector<8x128xf32>, vector<1x8xf32> -> vector<1x8xf32>
    %cst_12 = arith.constant 0.67965436 : f32
    %20 = vector.broadcast %cst_12 : f32 to vector<1x8xf32>
    %21 = arith.addf %19, %20 : vector<1x8xf32>
    %22 = vector.shape_cast %21 : vector<1x8xf32> to vector<1x1x8xf32>
    %c0_13 = arith.constant 0 : index
    %c0_14 = arith.constant 0 : index
    %c0_15 = arith.constant 0 : index
    %23 = vector.load %arg5[%c0_13, %c0_14, %c0_15] : memref<1x1x8xf32, #tpu.memory_space<vmem>>, vector<1x1x8xf32>
    tpu.vector_store %arg5[%c0_13, %c0_14, %c0_15], %22 {strides = array<i32>} : memref<1x1x8xf32, #tpu.memory_space<vmem>>, vector<1x1x8xf32>,
    return
  }
  func.func @transform_0(%arg0: i32) -> (i32, i32) {
    %c0_i32 = arith.constant 0 : i32
    %c0_i32_0 = arith.constant 0 : i32
    return %arg0, %c0_i32 : i32, i32
  }
  func.func @transform_1(%arg0: i32) -> (i32, i32) {
    %c0_i32 = arith.constant 0 : i32
    %c0_i32_0 = arith.constant 0 : i32
    %c0_i32_1 = arith.constant 0 : i32
    return %c0_i32, %c0_i32_0 : i32, i32
  }
  func.func @transform_2(%arg0: i32) -> (i32, i32) {
    %c0_i32 = arith.constant 0 : i32
    %c0_i32_0 = arith.constant 0 : i32
    %c0_i32_1 = arith.constant 0 : i32
    return %c0_i32, %c0_i32_0 : i32, i32
  }
  func.func @transform_3(%arg0: i32) -> (i32, i32) {
    %c0_i32 = arith.constant 0 : i32
    %c0_i32_0 = arith.constant 0 : i32
    %c0_i32_1 = arith.constant 0 : i32
    return %c0_i32, %c0_i32_0 : i32, i32
  }
  func.func @transform_4(%arg0: i32) -> (i32, i32, i32) {
    %c0_i32 = arith.constant 0 : i32
    %c0_i32_0 = arith.constant 0 : i32
    %c0_i32_1 = arith.constant 0 : i32
    return %arg0, %c0_i32, %c0_i32_0 : i32, i32, i32
  }
}

</mosaic_0001>

<bundles_post_ra>
// kernel: tpu_custom_call.1
= control target key start
LH: loop header
LB: loop body
LE: loop exit
PB: predicated region body
PF: predicated region fallthrough
CT: control target
= control target key end

     0   :  { %9 = vsyncpa [#allocation3], 0  ;;  %s631_s0 = inlined_call_operand.hbm [shape: f32[2,1024], index: 0, kind: input, shape index: {}]   ;;  %s632_s1 = inlined_call_operand.hbm [shape: f32[128,1024], index: 1, kind: input, shape index: {}]   ;;  %s633_s2 = inlined_call_operand.vmem [shape: f32[1,128], index: 2, kind: input, shape index: {}]   ;;  %s634_s3 = inlined_call_operand.vmem [shape: f32[1,128], index: 3, kind: input, shape index: {}]   ;;  %s635_s4 = inlined_call_operand.hbm [shape: f32[1,1,8], index: 4, kind: output, shape index: {}]  }
   0x1   :  { %10 = vsyncpa [#allocation6], 0 }
   0x2   :  { %11 = vsyncpa [#allocation4], 0 }
   0x3   :  { %15 = vsyncadd [#allocation3], 768  ;;  %s16_s17 = sshll.u32 %s631_s0, 4  ;;  %s581_s18 = smov [#allocation2]   ;;  %s17_s17 = int_to_ptr.hbm [resolvable:$true] %s16_s17 }
   0x4   :  { %s18_s19 = sshll.u32 %s581_s18, 4  ;;  %s29_s22 = sshll.u32 %s632_s1, 4  ;;  %s19_s19 = int_to_ptr.vmem [resolvable:$true] %s18_s19  ;;  %s30_s22 = int_to_ptr.hbm [resolvable:$true] %s29_s22 }
   0x5   :  { %s582_s23 = smov 256   ;;  %s583_s24 = smov 16  }
   0x6   :  { %24 = dma.hbm_to_vmem [thread:$0]  %s17_s17, 256, %s19_s19, [#allocation3], %s582_s23, %s582_s23, %s583_s24  }
   0x7   :  { %s584_s25 = smov [#allocation5]   ;;  %s585_s27 = smov 1024  }
   0x8   :  { %s31_s26 = sshll.u32 %s584_s25, 4  ;;  %s586_s28 = smov 64   ;;  %s32_s26 = int_to_ptr.vmem [resolvable:$true] %s31_s26 }
   0x9   :  { %37 = dma.hbm_to_vmem [thread:$0]  %s30_s22, 16384, %s32_s26, [#allocation6], %s585_s27, %s585_s27, %s586_s28  }
   0xa   :  { %575 = dma.done.wait [#allocation3], 1024  }
   0xb   :  { %576 = vsyncadd [#allocation3], 4294966272 }
   0xc   :  { %577 = dma.done.wait [#allocation6], 16384  }
   0xd   :  { %578 = vsyncadd [#allocation6], 4294950912  ;;  %v178_v0 = vld [vmem:[#allocation5 + $0x3c0] sm:$0xff]  ;;  %v180_v1 = vld [vmem:[#allocation5 + $0x3d0] sm:$0xff]  ;;  %s587_s5 = smov [#allocation7]   ;;  %s482_s9 = sshll.u32 %s635_s4, 4  ;;  %s483_s9 = int_to_ptr.hbm [resolvable:$true] %s482_s9 }
   0xe   :  { %v179_v2 = vld [vmem:[#allocation5 + $0x3c8] sm:$0xff]  ;;  %227 = vmatpush.xpose.msra.mxu0 %v178_v0  ;;  %267 = vmatpush.xpose.msra.mxu2 %v180_v1  ;;  %v181_v3 = vld [vmem:[#allocation5 + $0x3d8] sm:$0xff]  ;;  %v170_v4 = vld [vmem:[#allocation5 + $0x380] sm:$0xff]  ;;  %s480_s6 = sshll.u32 %s587_s5, 4  ;;  %vm473_vm0 = vcmask 57344   ;;  %s481_s6 = int_to_ptr.vmem [resolvable:$true] %s480_s6 }
   0xf   :  { %247 = vmatpush.xpose.msra.mxu1 %v179_v2  ;;  %287 = vmatpush.xpose.msra.mxu3 %v181_v3  ;;  %v172_v5 = vld [vmem:[#allocation5 + $0x390] sm:$0xff]  ;;  %v171_v6 = vld [vmem:[#allocation5 + $0x388] sm:$0xff]  ;;  %v173_v7 = vld [vmem:[#allocation5 + $0x398] sm:$0xff] }
  0x10   :  { %v162_v8 = vld [vmem:[#allocation5 + $0x340] sm:$0xff]  ;;  %v164_v9 = vld [vmem:[#allocation5 + $0x350] sm:$0xff]  ;;  %v163_v10 = vld [vmem:[#allocation5 + $0x348] sm:$0xff] }
  0x11   :  { %v165_v11 = vld [vmem:[#allocation5 + $0x358] sm:$0xff]  ;;  %v154_v12 = vld [vmem:[#allocation5 + $0x300] sm:$0xff]  ;;  %v156_v13 = vld [vmem:[#allocation5 + $0x310] sm:$0xff] }
  0x12   :  { %228 = vmatpush.xpose.msra.mxu0 %v170_v4  ;;  %268 = vmatpush.xpose.msra.mxu2 %v172_v5  ;;  %v155_v14 = vld [vmem:[#allocation5 + $0x308] sm:$0xff]  ;;  %v157_v15 = vld [vmem:[#allocation5 + $0x318] sm:$0xff]  ;;  %v146_v16 = vld [vmem:[#allocation5 + $0x2c0] sm:$0xff] }
  0x13   :  { %248 = vmatpush.xpose.msra.mxu1 %v171_v6  ;;  %288 = vmatpush.xpose.msra.mxu3 %v173_v7  ;;  %v148_v17 = vld [vmem:[#allocation5 + $0x2d0] sm:$0xff]  ;;  %v147_v18 = vld [vmem:[#allocation5 + $0x2c8] sm:$0xff]  ;;  %v149_v19 = vld [vmem:[#allocation5 + $0x2d8] sm:$0xff] }
  0x14   :  { %v138_v20 = vld [vmem:[#allocation5 + $0x280] sm:$0xff]  ;;  %v140_v21 = vld [vmem:[#allocation5 + $0x290] sm:$0xff]  ;;  %v139_v22 = vld [vmem:[#allocation5 + $0x288] sm:$0xff] }
  0x15   :  { %v141_v23 = vld [vmem:[#allocation5 + $0x298] sm:$0xff]  ;;  %v130_v24 = vld [vmem:[#allocation5 + $0x240] sm:$0xff]  ;;  %v132_v25 = vld [vmem:[#allocation5 + $0x250] sm:$0xff] }
  0x16   :  { %229 = vmatpush.xpose.msra.mxu0 %v162_v8  ;;  %269 = vmatpush.xpose.msra.mxu2 %v164_v9  ;;  %v131_v26 = vld [vmem:[#allocation5 + $0x248] sm:$0xff]  ;;  %v133_v27 = vld [vmem:[#allocation5 + $0x258] sm:$0xff]  ;;  %v122_v28 = vld [vmem:[#allocation5 + $0x200] sm:$0xff] }
  0x17   :  { %249 = vmatpush.xpose.msra.mxu1 %v163_v10  ;;  %289 = vmatpush.xpose.msra.mxu3 %v165_v11  ;;  %v124_v29 = vld [vmem:[#allocation5 + $0x210] sm:$0xff]  ;;  %v123_v30 = vld [vmem:[#allocation5 + $0x208] sm:$0xff]  ;;  %v125_v31 = vld [vmem:[#allocation5 + $0x218] sm:$0xff] }
  0x18   :  { %v114_v32 = vld [vmem:[#allocation5 + $0x1c0] sm:$0xff]  ;;  %v116_v33 = vld [vmem:[#allocation5 + $0x1d0] sm:$0xff]  ;;  %v115_v34 = vld [vmem:[#allocation5 + $0x1c8] sm:$0xff] }
  0x19   :  { %v117_v35 = vld [vmem:[#allocation5 + $0x1d8] sm:$0xff]  ;;  %v106_v36 = vld [vmem:[#allocation5 + $0x180] sm:$0xff]  ;;  %v108_v37 = vld [vmem:[#allocation5 + $0x190] sm:$0xff] }
  0x1a   :  { %230 = vmatpush.xpose.msra.mxu0 %v154_v12  ;;  %270 = vmatpush.xpose.msra.mxu2 %v156_v13  ;;  %v107_v38 = vld [vmem:[#allocation5 + $0x188] sm:$0xff]  ;;  %v109_v39 = vld [vmem:[#allocation5 + $0x198] sm:$0xff]  ;;  %v98_v40 = vld [vmem:[#allocation5 + $0x140] sm:$0xff] }
  0x1b   :  { %250 = vmatpush.xpose.msra.mxu1 %v155_v14  ;;  %290 = vmatpush.xpose.msra.mxu3 %v157_v15  ;;  %v100_v41 = vld [vmem:[#allocation5 + $0x150] sm:$0xff]  ;;  %v99_v42 = vld [vmem:[#allocation5 + $0x148] sm:$0xff]  ;;  %v101_v43 = vld [vmem:[#allocation5 + $0x158] sm:$0xff] }
  0x1c   :  { %v90_v44 = vld [vmem:[#allocation5 + $0x100] sm:$0xff]  ;;  %v92_v45 = vld [vmem:[#allocation5 + $0x110] sm:$0xff]  ;;  %v91_v46 = vld [vmem:[#allocation5 + $0x108] sm:$0xff] }
  0x1d   :  { %v93_v47 = vld [vmem:[#allocation5 + $0x118] sm:$0xff]  ;;  %v82_v48 = vld [vmem:[#allocation5 + $0xc0] sm:$0xff]  ;;  %v84_v49 = vld [vmem:[#allocation5 + $0xd0] sm:$0xff] }
  0x1e   :  { %231 = vmatpush.xpose.msra.mxu0 %v146_v16  ;;  %271 = vmatpush.xpose.msra.mxu2 %v148_v17  ;;  %v83_v50 = vld [vmem:[#allocation5 + $0xc8] sm:$0xff]  ;;  %v85_v51 = vld [vmem:[#allocation5 + $0xd8] sm:$0xff]  ;;  %v74_v52 = vld [vmem:[#allocation5 + $0x80] sm:$0xff] }
  0x1f   :  { %251 = vmatpush.xpose.msra.mxu1 %v147_v18  ;;  %291 = vmatpush.xpose.msra.mxu3 %v149_v19  ;;  %v76_v53 = vld [vmem:[#allocation5 + $0x90] sm:$0xff]  ;;  %v75_v54 = vld [vmem:[#allocation5 + $0x88] sm:$0xff]  ;;  %v77_v55 = vld [vmem:[#allocation5 + $0x98] sm:$0xff] }
  0x20   :  { %v66_v56 = vld [vmem:[#allocation5 + $0x40] sm:$0xff]  ;;  %v68_v57 = vld [vmem:[#allocation5 + $0x50] sm:$0xff]  ;;  %v67_v58 = vld [vmem:[#allocation5 + $0x48] sm:$0xff] }
  0x21   :  { %v69_v59 = vld [vmem:[#allocation5 + $0x58] sm:$0xff]  ;;  %v58_v60 = vld [vmem:[#allocation5] sm:$0xff]  ;;  %v60_v61 = vld [vmem:[#allocation5 + $0x10] sm:$0xff] }
  0x22   :  { %232 = vmatpush.xpose.msra.mxu0 %v138_v20  ;;  %272 = vmatpush.xpose.msra.mxu2 %v140_v21  ;;  %v182_v62 = vld [vmem:[#allocation5 + $0x3e0] sm:$0xff]  ;;  %v184_v63 = vld [vmem:[#allocation5 + $0x3f0] sm:$0xff]  ;;  %v59_v0 = vld [vmem:[#allocation5 + $0x8] sm:$0xff] }
  0x23   :  { %252 = vmatpush.xpose.msra.mxu1 %v139_v22  ;;  %292 = vmatpush.xpose.msra.mxu3 %v141_v23  ;;  %v61_v1 = vld [vmem:[#allocation5 + $0x18] sm:$0xff]  ;;  %v183_v2 = vld [vmem:[#allocation5 + $0x3e8] sm:$0xff]  ;;  %v174_v4 = vld [vmem:[#allocation5 + $0x3a0] sm:$0xff] }
  0x24   :  { %v185_v3 = vld [vmem:[#allocation5 + $0x3f8] sm:$0xff]  ;;  %v176_v5 = vld [vmem:[#allocation5 + $0x3b0] sm:$0xff]  ;;  %v175_v6 = vld [vmem:[#allocation5 + $0x3a8] sm:$0xff] }
  0x25   :  { %v177_v7 = vld [vmem:[#allocation5 + $0x3b8] sm:$0xff]  ;;  %v166_v8 = vld [vmem:[#allocation5 + $0x360] sm:$0xff]  ;;  %v168_v9 = vld [vmem:[#allocation5 + $0x370] sm:$0xff] }
  0x26   :  { %233 = vmatpush.xpose.msra.mxu0 %v130_v24  ;;  %273 = vmatpush.xpose.msra.mxu2 %v132_v25  ;;  %v167_v10 = vld [vmem:[#allocation5 + $0x368] sm:$0xff]  ;;  %v169_v11 = vld [vmem:[#allocation5 + $0x378] sm:$0xff]  ;;  %v158_v12 = vld [vmem:[#allocation5 + $0x320] sm:$0xff] }
  0x27   :  { %253 = vmatpush.xpose.msra.mxu1 %v131_v26  ;;  %293 = vmatpush.xpose.msra.mxu3 %v133_v27  ;;  %v160_v13 = vld [vmem:[#allocation5 + $0x330] sm:$0xff]  ;;  %v159_v14 = vld [vmem:[#allocation5 + $0x328] sm:$0xff]  ;;  %v161_v15 = vld [vmem:[#allocation5 + $0x338] sm:$0xff] }
  0x28   :  { %v150_v16 = vld [vmem:[#allocation5 + $0x2e0] sm:$0xff]  ;;  %v52_v18 = vld [vmem:[#allocation2 + $0x10] sm:$0xff]  ;;  %v151_v22 = vld [vmem:[#allocation5 + $0x2e8] sm:$0xff] }
  0x29   :  { %v50_v17 = vld [vmem:[#allocation2] sm:$0xff]  ;;  %v152_v19 = vld [vmem:[#allocation5 + $0x2f0] sm:$0xff]  ;;  %198 = vst [vmem:[#allocation1 + $0x1] ss:$4 sm:$0xff] %v52_v18  ;;  %v153_v23 = vld [vmem:[#allocation5 + $0x2f8] sm:$0xff] }
  0x2a   :  { %234 = vmatpush.xpose.msra.mxu0 %v122_v28  ;;  %274 = vmatpush.xpose.msra.mxu2 %v124_v29  ;;  %v54_v20 = vld [vmem:[#allocation2 + $0x20] sm:$0xff]  ;;  %v56_v21 = vld [vmem:[#allocation2 + $0x30] sm:$0xff]  ;;  %196 = vst [vmem:[#allocation1] ss:$4 sm:$0xff] %v50_v17  ;;  %v143_v26 = vld [vmem:[#allocation5 + $0x2a8] sm:$0xff] }
  0x2b   :  { %254 = vmatpush.xpose.msra.mxu1 %v123_v30  ;;  %294 = vmatpush.xpose.msra.mxu3 %v125_v31  ;;  %200 = vst [vmem:[#allocation1 + $0x2] ss:$4 sm:$0xff] %v54_v20  ;;  %v142_v24 = vld [vmem:[#allocation5 + $0x2a0] sm:$0xff]  ;;  %v144_v25 = vld [vmem:[#allocation5 + $0x2b0] sm:$0xff]  ;;  %v145_v27 = vld [vmem:[#allocation5 + $0x2b8] sm:$0xff] }
  0x2c   :  { %202 = vst [vmem:[#allocation1 + $0x3] ss:$4 sm:$0xff] %v56_v21  ;;  %v134_v28 = vld [vmem:[#allocation5 + $0x260] sm:$0xff]  ;;  %v136_v29 = vld [vmem:[#allocation5 + $0x270] sm:$0xff]  ;;  %v135_v30 = vld [vmem:[#allocation5 + $0x268] sm:$0xff] }
  0x2d   :  { %v137_v31 = vld [vmem:[#allocation5 + $0x278] sm:$0xff] }
  0x2e   :  { %235 = vmatpush.xpose.msra.mxu0 %v114_v32  ;;  %275 = vmatpush.xpose.msra.mxu2 %v116_v33  ;;  %v387_v32 = vmul.f32 %v50_v17, %v50_v17  ;;  %v89_v17 = vld [vmem:[#allocation5 + $0xf8] sm:$0xff] }
  0x2f   :  { %255 = vmatpush.xpose.msra.mxu1 %v115_v34  ;;  %295 = vmatpush.xpose.msra.mxu3 %v117_v35  ;;  %v389_v34 = vmul.f32 %v52_v18, %v52_v18  ;;  %v78_v18 = vld [vmem:[#allocation5 + $0xa0] sm:$0xff] }
  0x32   :  { %236 = vmatpush.xpose.msra.mxu0 %v106_v36  ;;  %276 = vmatpush.xpose.msra.mxu2 %v108_v37  ;;  %v391_v36 = vmul.f32 %v54_v20, %v54_v20 }
  0x33   :  { %256 = vmatpush.xpose.msra.mxu1 %v107_v38  ;;  %296 = vmatpush.xpose.msra.mxu3 %v109_v39  ;;  %v213_v33 = vld.sshfl [vmem:[#allocation1 + $0x10] sm:$0xff pattern:$0x73625140]  ;;  %v211_v35 = vld.sshfl [vmem:[#allocation1] sm:$0xff pattern:$0x73625140] }
  0x34   :  { %v214_v37 = vld.sshfl [vmem:[#allocation1 + $0x18] sm:$0xff pattern:$0x73625140]  ;;  %v126_v38 = vld [vmem:[#allocation5 + $0x220] sm:$0xff] }
  0x35   :  { %v128_v39 = vld [vmem:[#allocation5 + $0x230] sm:$0xff] }
  0x36   :  { %237 = vmatpush.xpose.msra.mxu0 %v98_v40  ;;  %277 = vmatpush.xpose.msra.mxu2 %v100_v41  ;;  %v393_v40 = vmul.f32 %v56_v21, %v56_v21  ;;  %v212_v41 = vld.sshfl [vmem:[#allocation1 + $0x8] sm:$0xff pattern:$0x73625140]  ;;  %v79_v21 = vld [vmem:[#allocation5 + $0xa8] sm:$0xff] }
  0x37   :  { %257 = vmatpush.xpose.msra.mxu1 %v99_v42  ;;  %297 = vmatpush.xpose.msra.mxu3 %v101_v43  ;;  %403 = vst [vmem:[#allocation1] ss:$4 sm:$0xff] %v387_v32  ;;  %v127_v42 = vld [vmem:[#allocation5 + $0x228] sm:$0xff]  ;;  %v129_v43 = vld [vmem:[#allocation5 + $0x238] sm:$0xff] }
  0x38   :  { %405 = vst [vmem:[#allocation1 + $0x1] ss:$4 sm:$0xff] %v389_v34  ;;  %v64_v34 = vld [vmem:[#allocation5 + $0x30] sm:$0xff] }
  0x39   :  { %407 = vst [vmem:[#allocation1 + $0x2] ss:$4 sm:$0xff] %v391_v36  ;;  %v63_v36 = vld [vmem:[#allocation5 + $0x28] sm:$0xff] }
  0x3a   :  { %238 = vmatpush.xpose.msra.mxu0 %v90_v44  ;;  %278 = vmatpush.xpose.msra.mxu2 %v92_v45  ;;  %v51_v44 = vld [vmem:[#allocation2 + $0x8] sm:$0xff]  ;;  %v53_v45 = vld [vmem:[#allocation2 + $0x18] sm:$0xff]  ;;  %409 = vst [vmem:[#allocation1 + $0x3] ss:$4 sm:$0xff] %v393_v40 }
  0x3b   :  { %258 = vmatpush.xpose.msra.mxu1 %v91_v46  ;;  %298 = vmatpush.xpose.msra.mxu3 %v93_v47  ;;  %v118_v46 = vld [vmem:[#allocation5 + $0x1e0] sm:$0xff]  ;;  %v120_v47 = vld [vmem:[#allocation5 + $0x1f0] sm:$0xff]  ;;  %204 = vst [vmem:[#allocation1 + $0x20] ss:$4 sm:$0xff] %v51_v44 }
  0x3c   :  { %206 = vst [vmem:[#allocation1 + $0x21] ss:$4 sm:$0xff] %v53_v45 }
  0x3e   :  { %239 = vmatpush.xpose.msra.mxu0 %v82_v48  ;;  %279 = vmatpush.xpose.msra.mxu2 %v84_v49  ;;  %v55_v48 = vld [vmem:[#allocation2 + $0x28] sm:$0xff]  ;;  %v57_v49 = vld [vmem:[#allocation2 + $0x38] sm:$0xff] }
  0x3f   :  { %259 = vmatpush.xpose.msra.mxu1 %v83_v50  ;;  %299 = vmatpush.xpose.msra.mxu3 %v85_v51  ;;  %v119_v50 = vld [vmem:[#allocation5 + $0x1e8] sm:$0xff]  ;;  %v121_v51 = vld [vmem:[#allocation5 + $0x1f8] sm:$0xff]  ;;  %208 = vst [vmem:[#allocation1 + $0x22] ss:$4 sm:$0xff] %v55_v48 }
  0x40   :  { %210 = vst [vmem:[#allocation1 + $0x23] ss:$4 sm:$0xff] %v57_v49 }
  0x42   :  { %240 = vmatpush.xpose.msra.mxu0 %v74_v52  ;;  %280 = vmatpush.xpose.msra.mxu2 %v76_v53  ;;  %v110_v52 = vld [vmem:[#allocation5 + $0x1a0] sm:$0xff]  ;;  %v112_v53 = vld [vmem:[#allocation5 + $0x1b0] sm:$0xff] }
  0x43   :  { %260 = vmatpush.xpose.msra.mxu1 %v75_v54  ;;  %300 = vmatpush.xpose.msra.mxu3 %v77_v55  ;;  %v111_v54 = vld [vmem:[#allocation5 + $0x1a8] sm:$0xff]  ;;  %v113_v55 = vld [vmem:[#allocation5 + $0x1b8] sm:$0xff] }
  0x46   :  { %241 = vmatpush.xpose.msra.mxu0 %v66_v56  ;;  %281 = vmatpush.xpose.msra.mxu2 %v68_v57  ;;  %v102_v56 = vld [vmem:[#allocation5 + $0x160] sm:$0xff]  ;;  %v104_v57 = vld [vmem:[#allocation5 + $0x170] sm:$0xff] }
  0x47   :  { %261 = vmatpush.xpose.msra.mxu1 %v67_v58  ;;  %301 = vmatpush.xpose.msra.mxu3 %v69_v59  ;;  %v103_v58 = vld [vmem:[#allocation5 + $0x168] sm:$0xff]  ;;  %v388_v59 = vmul.f32 %v51_v44, %v51_v44 }
  0x4a   :  { %242 = vmatpush.xpose.msra.mxu0 %v58_v60  ;;  %282 = vmatpush.xpose.msra.mxu2 %v60_v61  ;;  %v418_v60 = vld.sshfl [vmem:[#allocation1] sm:$0xff pattern:$0x73625140]  ;;  %v419_v61 = vld.sshfl [vmem:[#allocation1 + $0x8] sm:$0xff pattern:$0x73625140] }
  0x4b   :  { %262 = vmatpush.xpose.msra.mxu1 %v59_v0  ;;  %302 = vmatpush.xpose.msra.mxu3 %v61_v1  ;;  %v96_v0 = vld [vmem:[#allocation5 + $0x130] sm:$0xff]  ;;  %v390_v1 = vmul.f32 %v53_v45, %v53_v45 }
  0x4d   :  { %283 = vmatmul.f32.vlgmr.msra.gmra.mxu2 %v213_v33  ;;  %243 = vmatmul.f32.vlgmr.msra.gmra.mxu0 %v211_v35  ;;  %v62_v33 = vld [vmem:[#allocation5 + $0x20] sm:$0xff] }
  0x4e   :  { %307 = vmatpush.xpose.msrb.mxu0 %v182_v62  ;;  %347 = vmatpush.xpose.msrb.mxu2 %v184_v63  ;;  %v105_v62 = vld [vmem:[#allocation5 + $0x178] sm:$0xff]  ;;  %v94_v63 = vld [vmem:[#allocation5 + $0x120] sm:$0xff] }
  0x4f   :  { %327 = vmatpush.xpose.msrb.mxu1 %v183_v2  ;;  %367 = vmatpush.xpose.msrb.mxu3 %v185_v3  ;;  %v619_v2 = vld.sshfl [vmem:[#allocation1 + $0x20] sm:$0xff pattern:$0x73625140]  ;;  %v392_v3 = vmul.f32 %v55_v48, %v55_v48 }
  0x50   :  { %303 = vmatmul.f32.vlgmr.msra.gmra.mxu3 %v214_v37  ;;  %263 = vmatmul.f32.vlgmr.msra.gmra.mxu1 %v212_v41  ;;  %v65_v37 = vld [vmem:[#allocation5 + $0x38] sm:$0xff] }
  0x52   :  { %308 = vmatpush.xpose.msrb.mxu0 %v174_v4  ;;  %348 = vmatpush.xpose.msrb.mxu2 %v176_v5  ;;  %v217_v4 = vld.sshfl [vmem:[#allocation1 + $0x30] sm:$0xff pattern:$0x73625140]  ;;  %v394_v5 = vmul.f32 %v57_v49, %v57_v49 }
  0x53   :  { %328 = vmatpush.xpose.msrb.mxu1 %v175_v6  ;;  %368 = vmatpush.xpose.msrb.mxu3 %v177_v7  ;;  %v216_v6 = vld.sshfl [vmem:[#allocation1 + $0x28] sm:$0xff pattern:$0x73625140]  ;;  %v218_v7 = vld.sshfl [vmem:[#allocation1 + $0x38] sm:$0xff pattern:$0x73625140] }
  0x54   :  { %411 = vst [vmem:[#allocation1 + $0x20] ss:$4 sm:$0xff] %v388_v59 }
  0x55   :  { %413 = vst [vmem:[#allocation1 + $0x21] ss:$4 sm:$0xff] %v390_v1 }
  0x56   :  { %309 = vmatpush.xpose.msrb.mxu0 %v166_v8  ;;  %349 = vmatpush.xpose.msrb.mxu2 %v168_v9  ;;  %v434_v8 = vadd.f32 %v419_v61, %v418_v60  ;;  %v420_v9 = vld.sshfl [vmem:[#allocation1 + $0x10] sm:$0xff pattern:$0x73625140]  ;;  %415 = vst [vmem:[#allocation1 + $0x22] ss:$4 sm:$0xff] %v392_v3 }
  0x57   :  { %329 = vmatpush.xpose.msrb.mxu1 %v167_v10  ;;  %369 = vmatpush.xpose.msrb.mxu3 %v169_v11  ;;  %v95_v10 = vld [vmem:[#allocation5 + $0x128] sm:$0xff]  ;;  %v97_v11 = vld [vmem:[#allocation5 + $0x138] sm:$0xff]  ;;  %417 = vst [vmem:[#allocation1 + $0x23] ss:$4 sm:$0xff] %v394_v5 }
  0x5a   :  { %310 = vmatpush.xpose.msrb.mxu0 %v158_v12  ;;  %350 = vmatpush.xpose.msrb.mxu2 %v160_v13  ;;  %v86_v12 = vld [vmem:[#allocation5 + $0xe0] sm:$0xff]  ;;  %v88_v13 = vld [vmem:[#allocation5 + $0xf0] sm:$0xff] }
  0x5b   :  { %330 = vmatpush.xpose.msrb.mxu1 %v159_v14  ;;  %370 = vmatpush.xpose.msrb.mxu3 %v161_v15  ;;  %v435_v14 = vadd.f32 %v434_v8, %v420_v9  ;;  %v421_v15 = vld.sshfl [vmem:[#allocation1 + $0x18] sm:$0xff pattern:$0x73625140] }
  0x5d   :  { %v436_v20 = vadd.f32 %v435_v14, %v421_v15 }
  0x5e   :  { %311 = vmatpush.xpose.msrb.mxu0 %v150_v16  ;;  %351 = vmatpush.xpose.msrb.mxu2 %v152_v19  ;;  %v87_v16 = vld [vmem:[#allocation5 + $0xe8] sm:$0xff]  ;;  %v80_v19 = vld [vmem:[#allocation5 + $0xb0] sm:$0xff] }
  0x5f   :  { %331 = vmatpush.xpose.msrb.mxu1 %v151_v22  ;;  %371 = vmatpush.xpose.msrb.mxu3 %v153_v23  ;;  %v81_v22 = vld [vmem:[#allocation5 + $0xb8] sm:$0xff]  ;;  %v425_v32 = vld.sshfl [vmem:[#allocation1 + $0x38] sm:$0xff pattern:$0x73625140] }
  0x60   :  { %v422_v23 = vld.sshfl [vmem:[#allocation1 + $0x20] sm:$0xff pattern:$0x73625140] }
  0x62   :  { %312 = vmatpush.xpose.msrb.mxu0 %v142_v24  ;;  %352 = vmatpush.xpose.msrb.mxu2 %v144_v25  ;;  %v423_v24 = vld.sshfl [vmem:[#allocation1 + $0x28] sm:$0xff pattern:$0x73625140] }
  0x63   :  { %332 = vmatpush.xpose.msrb.mxu1 %v143_v26  ;;  %372 = vmatpush.xpose.msrb.mxu3 %v145_v27  ;;  %v70_v25 = vld [vmem:[#allocation5 + $0x60] sm:$0xff]  ;;  %v72_v26 = vld [vmem:[#allocation5 + $0x70] sm:$0xff]  ;;  %v437_v27 = vadd.f32 %v436_v20, %v422_v23 }
  0x66   :  { %313 = vmatpush.xpose.msrb.mxu0 %v134_v28  ;;  %353 = vmatpush.xpose.msrb.mxu2 %v136_v29  ;;  %v424_v28 = vld.sshfl [vmem:[#allocation1 + $0x30] sm:$0xff pattern:$0x73625140] }
  0x67   :  { %333 = vmatpush.xpose.msrb.mxu1 %v135_v30  ;;  %373 = vmatpush.xpose.msrb.mxu3 %v137_v31  ;;  %v71_v29 = vld [vmem:[#allocation5 + $0x68] sm:$0xff]  ;;  %v73_v30 = vld [vmem:[#allocation5 + $0x78] sm:$0xff]  ;;  %v438_v31 = vadd.f32 %v437_v27, %v423_v24 }
  0x69   :  { %v439_v35 = vadd.f32 %v438_v31, %v424_v28 }
  0x6a   :  { %314 = vmatpush.xpose.msrb.mxu0 %v126_v38  ;;  %354 = vmatpush.xpose.msrb.mxu2 %v128_v39 }
  0x6b   :  { %334 = vmatpush.xpose.msrb.mxu1 %v127_v42  ;;  %374 = vmatpush.xpose.msrb.mxu3 %v129_v43  ;;  %v440_v38 = vadd.f32 %v439_v35, %v425_v32 }
  0x6d   :  { %441 = vadd.xlane.f32.xlu0 %v440_v38 }
  0x6e   :  { %315 = vmatpush.xpose.msrb.mxu0 %v118_v46  ;;  %355 = vmatpush.xpose.msrb.mxu2 %v120_v47 }
  0x6f   :  { %335 = vmatpush.xpose.msrb.mxu1 %v119_v50  ;;  %375 = vmatpush.xpose.msrb.mxu3 %v121_v51 }
  0x72   :  { %316 = vmatpush.xpose.msrb.mxu0 %v110_v52  ;;  %356 = vmatpush.xpose.msrb.mxu2 %v112_v53 }
  0x73   :  { %336 = vmatpush.xpose.msrb.mxu1 %v111_v54  ;;  %376 = vmatpush.xpose.msrb.mxu3 %v113_v55 }
  0x76   :  { %317 = vmatpush.xpose.msrb.mxu0 %v102_v56  ;;  %357 = vmatpush.xpose.msrb.mxu2 %v104_v57  ;;  %v500_v57 = vld [vmem:[%s634_s3] ss:$0 sm:$0xff] }
  0x77   :  { %337 = vmatpush.xpose.msrb.mxu1 %v103_v58  ;;  %377 = vmatpush.xpose.msrb.mxu3 %v105_v62 }
  0x7a   :  { %318 = vmatpush.xpose.msrb.mxu0 %v94_v63  ;;  %358 = vmatpush.xpose.msrb.mxu2 %v96_v0  ;;  %v186_v63 = vld [vmem:[%s633_s2] sm:$0x1] }
  0x7b   :  { %338 = vmatpush.xpose.msrb.mxu1 %v95_v10  ;;  %378 = vmatpush.xpose.msrb.mxu3 %v97_v11 }
  0x7e   :  { %319 = vmatpush.xpose.msrb.mxu0 %v86_v12  ;;  %359 = vmatpush.xpose.msrb.mxu2 %v88_v13 }
  0x7f   :  { %339 = vmatpush.xpose.msrb.mxu1 %v87_v16  ;;  %379 = vmatpush.xpose.msrb.mxu3 %v89_v17 }
  0x82   :  { %320 = vmatpush.xpose.msrb.mxu0 %v78_v18  ;;  %360 = vmatpush.xpose.msrb.mxu2 %v80_v19 }
  0x83   :  { %340 = vmatpush.xpose.msrb.mxu1 %v79_v21  ;;  %380 = vmatpush.xpose.msrb.mxu3 %v81_v22 }
  0x86   :  { %321 = vmatpush.xpose.msrb.mxu0 %v70_v25  ;;  %361 = vmatpush.xpose.msrb.mxu2 %v72_v26 }
  0x87   :  { %341 = vmatpush.xpose.msrb.mxu1 %v71_v29  ;;  %381 = vmatpush.xpose.msrb.mxu3 %v73_v30 }
  0x8a   :  { %322 = vmatpush.xpose.msrb.mxu0 %v62_v33  ;;  %362 = vmatpush.xpose.msrb.mxu2 %v64_v34 }
  0x8b   :  { %342 = vmatpush.xpose.msrb.mxu1 %v63_v36  ;;  %382 = vmatpush.xpose.msrb.mxu3 %v65_v37 }
  0x8d   :  { %323 = vmatmul.f32.vlgmr.msrb.gmra.mxu0 %v619_v2  ;;  %363 = vmatmul.f32.vlgmr.msrb.gmra.mxu2 %v217_v4 }
  0x8e   :  { %343 = vmatmul.f32.vlgmr.msrb.gmra.mxu1 %v216_v6  ;;  %383 = vmatmul.f32.vlgmr.msrb.gmra.mxu3 %v218_v7 }
  0xca   :  { %v244_v40 = vpop.f32.mrf.mxu0 }
  0xcd   :  { %v264_v39 = vpop.f32.mrf.mxu1 }
  0xce   :  { %v265_v41 = vadd.f32 %v264_v39, %v244_v40 }
  0xd0   :  { %v284_v42 = vpop.f32.mrf.mxu2 }
  0xd1   :  { %v285_v43 = vadd.f32 %v284_v42, %v265_v41 }
  0xd3   :  { %v304_v44 = vpop.f32.mrf.mxu3 }
  0xd4   :  { %v305_v45 = vadd.f32 %v304_v44, %v285_v43 }
  0xe0   :  { %v442_v51 = vpop.xlane.xlu0 %441 }
  0xe1   :  { %v444_v55 = vmul.f32 -0.0009765625, %v442_v51 }
 0x10a   :  { %v324_v46 = vpop.f32.mrf.mxu0 }
 0x10b   :  { %v325_v47 = vadd.f32 %v324_v46, %v305_v45  ;;  %v344_v48 = vpop.f32.mrf.mxu1 }
 0x10d   :  { %v345_v49 = vadd.f32 %v344_v48, %v325_v47 }
 0x110   :  { %v364_v50 = vpop.f32.mrf.mxu2 }
 0x111   :  { %v365_v52 = vadd.f32 %v364_v50, %v345_v49  ;;  %v384_v53 = vpop.f32.mrf.mxu3 }
 0x113   :  { %v385_v54 = vadd.f32 %v384_v53, %v365_v52 }
 0x115   :  { %v443_v56 = vmul.f32 0.001953125, %v385_v54 }
 0x117   :  { %v445_v58 = vadd.f32 %v444_v55, %v443_v56 }
 0x119   :  { %v449_v59 = vadd.f32 %v500_v57, %v445_v58 }
 0x11b   :  { %v450_v60 = vmin.f32 %v449_v59, 0.0 }
 0x11d   :  { %v451_v61 = vmul.f32 1.442695, %v450_v60 }
 0x11f   :  { %501 = vpow2.f32 %v451_v61 }
 0x125   :  { %v502_v62 = vpop.eup %501 }
 0x126   :  { %468 = vmatpush.xpose.msra.mxu0 %v502_v62 }
 0x129   :  { %469 = vmatmul.f32.vlgmr.msra.gmra.mxu0 %v186_v63 }
 0x1a6   :  { %v470_v0 = vpop.f32.mrf.mxu0 }
 0x1a7   :  { %v471_v1 = vadd.f32 0.67965436, %v470_v0 }
 0x1a9   :  { %474 = vst.msk [vmem:[#allocation7] sm:$0x1] %vm473_vm0, %v471_v1 }
 0x1aa   :  { %485 = dma.vmem_to_hbm [thread:$0]  %s481_s6, 16, %s483_s9, [#allocation4]  }
 0x1ab   :  { %579 = dma.done.wait [#allocation4], 16  }
 0x1ac   :  { %580 = vsyncadd [#allocation4], 4294967280 }
 0x1ad   :  { %490 = vsyncpa [#allocation3], 1 }
 0x1ae   :  { %491 = vsyncpa [#allocation6], 1 }
 0x1af   :  { %492 = vsyncpa [#allocation4], 1 }

// kernel: tpu_custom_call.1
= control target key start
LH: loop header
LB: loop body
LE: loop exit
PB: predicated region body
PF: predicated region fallthrough
CT: control target
= control target key end

     0   :  { %9 = vsyncpa [#allocation3], 0  ;;  %s631_s0 = inlined_call_operand.hbm [shape: f32[2,1024], index: 0, kind: input, shape index: {}]   ;;  %s632_s1 = inlined_call_operand.hbm [shape: f32[128,1024], index: 1, kind: input, shape index: {}]   ;;  %s633_s2 = inlined_call_operand.vmem [shape: f32[1,128], index: 2, kind: input, shape index: {}]   ;;  %s634_s3 = inlined_call_operand.vmem [shape: f32[1,128], index: 3, kind: input, shape index: {}]   ;;  %s635_s4 = inlined_call_operand.hbm [shape: f32[1,1,8], index: 4, kind: output, shape index: {}]  }
   0x1   :  { %10 = vsyncpa [#allocation6], 0 }
   0x2   :  { %11 = vsyncpa [#allocation4], 0 }
   0x3   :  { %15 = vsyncadd [#allocation3], 768  ;;  %s16_s17 = sshll.u32 %s631_s0, 4  ;;  %s581_s18 = smov [#allocation2]   ;;  %s17_s17 = int_to_ptr.hbm [resolvable:$true] %s16_s17 }
   0x4   :  { %s18_s19 = sshll.u32 %s581_s18, 4  ;;  %s29_s22 = sshll.u32 %s632_s1, 4  ;;  %s19_s19 = int_to_ptr.vmem [resolvable:$true] %s18_s19  ;;  %s30_s22 = int_to_ptr.hbm [resolvable:$true] %s29_s22 }
   0x5   :  { %s582_s23 = smov 256   ;;  %s583_s24 = smov 16  }
   0x6   :  { %24 = dma.hbm_to_vmem [thread:$0]  %s17_s17, 256, %s19_s19, [#allocation3], %s582_s23, %s582_s23, %s583_s24  }
   0x7   :  { %s584_s25 = smov [#allocation5]   ;;  %s585_s27 = smov 1024  }
   0x8   :  { %s31_s26 = sshll.u32 %s584_s25, 4  ;;  %s586_s28 = smov 64   ;;  %s32_s26 = int_to_ptr.vmem [resolvable:$true] %s31_s26 }
   0x9   :  { %37 = dma.hbm_to_vmem [thread:$0]  %s30_s22, 16384, %s32_s26, [#allocation6], %s585_s27, %s585_s27, %s586_s28  }
   0xa   :  { %575 = dma.done.wait [#allocation3], 1024  }
   0xb   :  { %576 = vsyncadd [#allocation3], 4294966272 }
   0xc   :  { %577 = dma.done.wait [#allocation6], 16384  }
   0xd   :  { %578 = vsyncadd [#allocation6], 4294950912  ;;  %v178_v0 = vld [vmem:[#allocation5 + $0x3c0] sm:$0xff]  ;;  %v180_v1 = vld [vmem:[#allocation5 + $0x3d0] sm:$0xff]  ;;  %s587_s5 = smov [#allocation7]   ;;  %s482_s9 = sshll.u32 %s635_s4, 4  ;;  %s483_s9 = int_to_ptr.hbm [resolvable:$true] %s482_s9 }
   0xe   :  { %v179_v2 = vld [vmem:[#allocation5 + $0x3c8] sm:$0xff]  ;;  %227 = vmatpush.xpose.msra.mxu0 %v178_v0  ;;  %267 = vmatpush.xpose.msra.mxu2 %v180_v1  ;;  %v181_v3 = vld [vmem:[#allocation5 + $0x3d8] sm:$0xff]  ;;  %v170_v4 = vld [vmem:[#allocation5 + $0x380] sm:$0xff]  ;;  %s480_s6 = sshll.u32 %s587_s5, 4  ;;  %vm473_vm0 = vcmask 57344   ;;  %s481_s6 = int_to_ptr.vmem [resolvable:$true] %s480_s6 }
   0xf   :  { %247 = vmatpush.xpose.msra.mxu1 %v179_v2  ;;  %287 = vmatpush.xpose.msra.mxu3 %v181_v3  ;;  %v172_v5 = vld [vmem:[#allocation5 + $0x390] sm:$0xff]  ;;  %v171_v6 = vld [vmem:[#allocation5 + $0x388] sm:$0xff]  ;;  %v173_v7 = vld [vmem:[#allocation5 + $0x398] sm:$0xff] }
  0x10   :  { %v162_v8 = vld [vmem:[#allocation5 + $0x340] sm:$0xff]  ;;  %v164_v9 = vld [vmem:[#allocation5 + $0x350] sm:$0xff]  ;;  %v163_v10 = vld [vmem:[#allocation5 + $0x348] sm:$0xff] }
  0x11   :  { %v165_v11 = vld [vmem:[#allocation5 + $0x358] sm:$0xff]  ;;  %v154_v12 = vld [vmem:[#allocation5 + $0x300] sm:$0xff]  ;;  %v156_v13 = vld [vmem:[#allocation5 + $0x310] sm:$0xff] }
  0x12   :  { %228 = vmatpush.xpose.msra.mxu0 %v170_v4  ;;  %268 = vmatpush.xpose.msra.mxu2 %v172_v5  ;;  %v155_v14 = vld [vmem:[#allocation5 + $0x308] sm:$0xff]  ;;  %v157_v15 = vld [vmem:[#allocation5 + $0x318] sm:$0xff]  ;;  %v146_v16 = vld [vmem:[#allocation5 + $0x2c0] sm:$0xff] }
  0x13   :  { %248 = vmatpush.xpose.msra.mxu1 %v171_v6  ;;  %288 = vmatpush.xpose.msra.mxu3 %v173_v7  ;;  %v148_v17 = vld [vmem:[#allocation5 + $0x2d0] sm:$0xff]  ;;  %v147_v18 = vld [vmem:[#allocation5 + $0x2c8] sm:$0xff]  ;;  %v149_v19 = vld [vmem:[#allocation5 + $0x2d8] sm:$0xff] }
  0x14   :  { %v138_v20 = vld [vmem:[#allocation5 + $0x280] sm:$0xff]  ;;  %v140_v21 = vld [vmem:[#allocation5 + $0x290] sm:$0xff]  ;;  %v139_v22 = vld [vmem:[#allocation5 + $0x288] sm:$0xff] }
  0x15   :  { %v141_v23 = vld [vmem:[#allocation5 + $0x298] sm:$0xff]  ;;  %v130_v24 = vld [vmem:[#allocation5 + $0x240] sm:$0xff]  ;;  %v132_v25 = vld [vmem:[#allocation5 + $0x250] sm:$0xff] }
  0x16   :  { %229 = vmatpush.xpose.msra.mxu0 %v162_v8  ;;  %269 = vmatpush.xpose.msra.mxu2 %v164_v9  ;;  %v131_v26 = vld [vmem:[#allocation5 + $0x248] sm:$0xff]  ;;  %v133_v27 = vld [vmem:[#allocation5 + $0x258] sm:$0xff]  ;;  %v122_v28 = vld [vmem:[#allocation5 + $0x200] sm:$0xff] }
  0x17   :  { %249 = vmatpush.xpose.msra.mxu1 %v163_v10  ;;  %289 = vmatpush.xpose.msra.mxu3 %v165_v11  ;;  %v124_v29 = vld [vmem:[#allocation5 + $0x210] sm:$0xff]  ;;  %v123_v30 = vld [vmem:[#allocation5 + $0x208] sm:$0xff]  ;;  %v125_v31 = vld [vmem:[#allocation5 + $0x218] sm:$0xff] }
  0x18   :  { %v114_v32 = vld [vmem:[#allocation5 + $0x1c0] sm:$0xff]  ;;  %v116_v33 = vld [vmem:[#allocation5 + $0x1d0] sm:$0xff]  ;;  %v115_v34 = vld [vmem:[#allocation5 + $0x1c8] sm:$0xff] }
  0x19   :  { %v117_v35 = vld [vmem:[#allocation5 + $0x1d8] sm:$0xff]  ;;  %v106_v36 = vld [vmem:[#allocation5 + $0x180] sm:$0xff]  ;;  %v108_v37 = vld [vmem:[#allocation5 + $0x190] sm:$0xff] }
  0x1a   :  { %230 = vmatpush.xpose.msra.mxu0 %v154_v12  ;;  %270 = vmatpush.xpose.msra.mxu2 %v156_v13  ;;  %v107_v38 = vld [vmem:[#allocation5 + $0x188] sm:$0xff]  ;;  %v109_v39 = vld [vmem:[#allocation5 + $0x198] sm:$0xff]  ;;  %v98_v40 = vld [vmem:[#allocation5 + $0x140] sm:$0xff] }
  0x1b   :  { %250 = vmatpush.xpose.msra.mxu1 %v155_v14  ;;  %290 = vmatpush.xpose.msra.mxu3 %v157_v15  ;;  %v100_v41 = vld [vmem:[#allocation5 + $0x150] sm:$0xff]  ;;  %v99_v42 = vld [vmem:[#allocation5 + $0x148] sm:$0xff]  ;;  %v101_v43 = vld [vmem:[#allocation5 + $0x158] sm:$0xff] }
  0x1c   :  { %v90_v44 = vld [vmem:[#allocation5 + $0x100] sm:$0xff]  ;;  %v92_v45 = vld [vmem:[#allocation5 + $0x110] sm:$0xff]  ;;  %v91_v46 = vld [vmem:[#allocation5 + $0x108] sm:$0xff] }
  0x1d   :  { %v93_v47 = vld [vmem:[#allocation5 + $0x118] sm:$0xff]  ;;  %v82_v48 = vld [vmem:[#allocation5 + $0xc0] sm:$0xff]  ;;  %v84_v49 = vld [vmem:[#allocation5 + $0xd0] sm:$0xff] }
  0x1e   :  { %231 = vmatpush.xpose.msra.mxu0 %v146_v16  ;;  %271 = vmatpush.xpose.msra.mxu2 %v148_v17  ;;  %v83_v50 = vld [vmem:[#allocation5 + $0xc8] sm:$0xff]  ;;  %v85_v51 = vld [vmem:[#allocation5 + $0xd8] sm:$0xff]  ;;  %v74_v52 = vld [vmem:[#allocation5 + $0x80] sm:$0xff] }
  0x1f   :  { %251 = vmatpush.xpose.msra.mxu1 %v147_v18  ;;  %291 = vmatpush.xpose.msra.mxu3 %v149_v19  ;;  %v76_v53 = vld [vmem:[#allocation5 + $0x90] sm:$0xff]  ;;  %v75_v54 = vld [vmem:[#allocation5 + $0x88] sm:$0xff]  ;;  %v77_v55 = vld [vmem:[#allocation5 + $0x98] sm:$0xff] }
  0x20   :  { %v66_v56 = vld [vmem:[#allocation5 + $0x40] sm:$0xff]  ;;  %v68_v57 = vld [vmem:[#allocation5 + $0x50] sm:$0xff]  ;;  %v67_v58 = vld [vmem:[#allocation5 + $0x48] sm:$0xff] }
  0x21   :  { %v69_v59 = vld [vmem:[#allocation5 + $0x58] sm:$0xff]  ;;  %v58_v60 = vld [vmem:[#allocation5] sm:$0xff]  ;;  %v60_v61 = vld [vmem:[#allocation5 + $0x10] sm:$0xff] }
  0x22   :  { %232 = vmatpush.xpose.msra.mxu0 %v138_v20  ;;  %272 = vmatpush.xpose.msra.mxu2 %v140_v21  ;;  %v182_v62 = vld [vmem:[#allocation5 + $0x3e0] sm:$0xff]  ;;  %v184_v63 = vld [vmem:[#allocation5 + $0x3f0] sm:$0xff]  ;;  %v59_v0 = vld [vmem:[#allocation5 + $0x8] sm:$0xff] }
  0x23   :  { %252 = vmatpush.xpose.msra.mxu1 %v139_v22  ;;  %292 = vmatpush.xpose.msra.mxu3 %v141_v23  ;;  %v61_v1 = vld [vmem:[#allocation5 + $0x18] sm:$0xff]  ;;  %v183_v2 = vld [vmem:[#allocation5 + $0x3e8] sm:$0xff]  ;;  %v174_v4 = vld [vmem:[#allocation5 + $0x3a0] sm:$0xff] }
  0x24   :  { %v185_v3 = vld [vmem:[#allocation5 + $0x3f8] sm:$0xff]  ;;  %v176_v5 = vld [vmem:[#allocation5 + $0x3b0] sm:$0xff]  ;;  %v175_v6 = vld [vmem:[#allocation5 + $0x3a8] sm:$0xff] }
  0x25   :  { %v177_v7 = vld [vmem:[#allocation5 + $0x3b8] sm:$0xff]  ;;  %v166_v8 = vld [vmem:[#allocation5 + $0x360] sm:$0xff]  ;;  %v168_v9 = vld [vmem:[#allocation5 + $0x370] sm:$0xff] }
  0x26   :  { %233 = vmatpush.xpose.msra.mxu0 %v130_v24  ;;  %273 = vmatpush.xpose.msra.mxu2 %v132_v25  ;;  %v167_v10 = vld [vmem:[#allocation5 + $0x368] sm:$0xff]  ;;  %v169_v11 = vld [vmem:[#allocation5 + $0x378] sm:$0xff]  ;;  %v158_v12 = vld [vmem:[#allocation5 + $0x320] sm:$0xff] }
  0x27   :  { %253 = vmatpush.xpose.msra.mxu1 %v131_v26  ;;  %293 = vmatpush.xpose.msra.mxu3 %v133_v27  ;;  %v160_v13 = vld [vmem:[#allocation5 + $0x330] sm:$0xff]  ;;  %v159_v14 = vld [vmem:[#allocation5 + $0x328] sm:$0xff]  ;;  %v161_v15 = vld [vmem:[#allocation5 + $0x338] sm:$0xff] }
  0x28   :  { %v150_v16 = vld [vmem:[#allocation5 + $0x2e0] sm:$0xff]  ;;  %v52_v18 = vld [vmem:[#allocation2 + $0x10] sm:$0xff]  ;;  %v151_v22 = vld [vmem:[#allocation5 + $0x2e8] sm:$0xff] }
  0x29   :  { %v50_v17 = vld [vmem:[#allocation2] sm:$0xff]  ;;  %v152_v19 = vld [vmem:[#allocation5 + $0x2f0] sm:$0xff]  ;;  %198 = vst [vmem:[#allocation1 + $0x1] ss:$4 sm:$0xff] %v52_v18  ;;  %v153_v23 = vld [vmem:[#allocation5 + $0x2f8] sm:$0xff] }
  0x2a   :  { %234 = vmatpush.xpose.msra.mxu0 %v122_v28  ;;  %274 = vmatpush.xpose.msra.mxu2 %v124_v29  ;;  %v54_v20 = vld [vmem:[#allocation2 + $0x20] sm:$0xff]  ;;  %v56_v21 = vld [vmem:[#allocation2 + $0x30] sm:$0xff]  ;;  %196 = vst [vmem:[#allocation1] ss:$4 sm:$0xff] %v50_v17  ;;  %v143_v26 = vld [vmem:[#allocation5 + $0x2a8] sm:$0xff] }
  0x2b   :  { %254 = vmatpush.xpose.msra.mxu1 %v123_v30  ;;  %294 = vmatpush.xpose.msra.mxu3 %v125_v31  ;;  %200 = vst [vmem:[#allocation1 + $0x2] ss:$4 sm:$0xff] %v54_v20  ;;  %v142_v24 = vld [vmem:[#allocation5 + $0x2a0] sm:$0xff]  ;;  %v144_v25 = vld [vmem:[#allocation5 + $0x2b0] sm:$0xff]  ;;  %v145_v27 = vld [vmem:[#allocation5 + $0x2b8] sm:$0xff] }
  0x2c   :  { %202 = vst [vmem:[#allocation1 + $0x3] ss:$4 sm:$0xff] %v56_v21  ;;  %v134_v28 = vld [vmem:[#allocation5 + $0x260] sm:$0xff]  ;;  %v136_v29 = vld [vmem:[#allocation5 + $0x270] sm:$0xff]  ;;  %v135_v30 = vld [vmem:[#allocation5 + $0x268] sm:$0xff] }
  0x2d   :  { %v137_v31 = vld [vmem:[#allocation5 + $0x278] sm:$0xff] }
  0x2e   :  { %235 = vmatpush.xpose.msra.mxu0 %v114_v32  ;;  %275 = vmatpush.xpose.msra.mxu2 %v116_v33  ;;  %v387_v32 = vmul.f32 %v50_v17, %v50_v17  ;;  %v89_v17 = vld [vmem:[#allocation5 + $0xf8] sm:$0xff] }
  0x2f   :  { %255 = vmatpush.xpose.msra.mxu1 %v115_v34  ;;  %295 = vmatpush.xpose.msra.mxu3 %v117_v35  ;;  %v389_v34 = vmul.f32 %v52_v18, %v52_v18  ;;  %v78_v18 = vld [vmem:[#allocation5 + $0xa0] sm:$0xff] }
  0x32   :  { %236 = vmatpush.xpose.msra.mxu0 %v106_v36  ;;  %276 = vmatpush.xpose.msra.mxu2 %v108_v37  ;;  %v391_v36 = vmul.f32 %v54_v20, %v54_v20 }
  0x33   :  { %256 = vmatpush.xpose.msra.mxu1 %v107_v38  ;;  %296 = vmatpush.xpose.msra.mxu3 %v109_v39  ;;  %v213_v33 = vld.sshfl [vmem:[#allocation1 + $0x10] sm:$0xff pattern:$0x73625140]  ;;  %v211_v35 = vld.sshfl [vmem:[#allocation1] sm:$0xff pattern:$0x73625140] }
  0x34   :  { %v214_v37 = vld.sshfl [vmem:[#allocation1 + $0x18] sm:$0xff pattern:$0x73625140]  ;;  %v126_v38 = vld [vmem:[#allocation5 + $0x220] sm:$0xff] }
  0x35   :  { %v128_v39 = vld [vmem:[#allocation5 + $0x230] sm:$0xff] }
  0x36   :  { %237 = vmatpush.xpose.msra.mxu0 %v98_v40  ;;  %277 = vmatpush.xpose.msra.mxu2 %v100_v41  ;;  %v393_v40 = vmul.f32 %v56_v21, %v56_v21  ;;  %v212_v41 = vld.sshfl [vmem:[#allocation1 + $0x8] sm:$0xff pattern:$0x73625140]  ;;  %v79_v21 = vld [vmem:[#allocation5 + $0xa8] sm:$0xff] }
  0x37   :  { %257 = vmatpush.xpose.msra.mxu1 %v99_v42  ;;  %297 = vmatpush.xpose.msra.mxu3 %v101_v43  ;;  %403 = vst [vmem:[#allocation1] ss:$4 sm:$0xff] %v387_v32  ;;  %v127_v42 = vld [vmem:[#allocation5 + $0x228] sm:$0xff]  ;;  %v129_v43 = vld [vmem:[#allocation5 + $0x238] sm:$0xff] }
  0x38   :  { %405 = vst [vmem:[#allocation1 + $0x1] ss:$4 sm:$0xff] %v389_v34  ;;  %v64_v34 = vld [vmem:[#allocation5 + $0x30] sm:$0xff] }
  0x39   :  { %407 = vst [vmem:[#allocation1 + $0x2] ss:$4 sm:$0xff] %v391_v36  ;;  %v63_v36 = vld [vmem:[#allocation5 + $0x28] sm:$0xff] }
  0x3a   :  { %238 = vmatpush.xpose.msra.mxu0 %v90_v44  ;;  %278 = vmatpush.xpose.msra.mxu2 %v92_v45  ;;  %v51_v44 = vld [vmem:[#allocation2 + $0x8] sm:$0xff]  ;;  %v53_v45 = vld [vmem:[#allocation2 + $0x18] sm:$0xff]  ;;  %409 = vst [vmem:[#allocation1 + $0x3] ss:$4 sm:$0xff] %v393_v40 }
  0x3b   :  { %258 = vmatpush.xpose.msra.mxu1 %v91_v46  ;;  %298 = vmatpush.xpose.msra.mxu3 %v93_v47  ;;  %v118_v46 = vld [vmem:[#allocation5 + $0x1e0] sm:$0xff]  ;;  %v120_v47 = vld [vmem:[#allocation5 + $0x1f0] sm:$0xff]  ;;  %204 = vst [vmem:[#allocation1 + $0x20] ss:$4 sm:$0xff] %v51_v44 }
  0x3c   :  { %206 = vst [vmem:[#allocation1 + $0x21] ss:$4 sm:$0xff] %v53_v45 }
  0x3e   :  { %239 = vmatpush.xpose.msra.mxu0 %v82_v48  ;;  %279 = vmatpush.xpose.msra.mxu2 %v84_v49  ;;  %v55_v48 = vld [vmem:[#allocation2 + $0x28] sm:$0xff]  ;;  %v57_v49 = vld [vmem:[#allocation2 + $0x38] sm:$0xff] }
  0x3f   :  { %259 = vmatpush.xpose.msra.mxu1 %v83_v50  ;;  %299 = vmatpush.xpose.msra.mxu3 %v85_v51  ;;  %v119_v50 = vld [vmem:[#allocation5 + $0x1e8] sm:$0xff]  ;;  %v121_v51 = vld [vmem:[#allocation5 + $0x1f8] sm:$0xff]  ;;  %208 = vst [vmem:[#allocation1 + $0x22] ss:$4 sm:$0xff] %v55_v48 }
  0x40   :  { %210 = vst [vmem:[#allocation1 + $0x23] ss:$4 sm:$0xff] %v57_v49 }
  0x42   :  { %240 = vmatpush.xpose.msra.mxu0 %v74_v52  ;;  %280 = vmatpush.xpose.msra.mxu2 %v76_v53  ;;  %v110_v52 = vld [vmem:[#allocation5 + $0x1a0] sm:$0xff]  ;;  %v112_v53 = vld [vmem:[#allocation5 + $0x1b0] sm:$0xff] }
  0x43   :  { %260 = vmatpush.xpose.msra.mxu1 %v75_v54  ;;  %300 = vmatpush.xpose.msra.mxu3 %v77_v55  ;;  %v111_v54 = vld [vmem:[#allocation5 + $0x1a8] sm:$0xff]  ;;  %v113_v55 = vld [vmem:[#allocation5 + $0x1b8] sm:$0xff] }
  0x46   :  { %241 = vmatpush.xpose.msra.mxu0 %v66_v56  ;;  %281 = vmatpush.xpose.msra.mxu2 %v68_v57  ;;  %v102_v56 = vld [vmem:[#allocation5 + $0x160] sm:$0xff]  ;;  %v104_v57 = vld [vmem:[#allocation5 + $0x170] sm:$0xff] }
  0x47   :  { %261 = vmatpush.xpose.msra.mxu1 %v67_v58  ;;  %301 = vmatpush.xpose.msra.mxu3 %v69_v59  ;;  %v103_v58 = vld [vmem:[#allocation5 + $0x168] sm:$0xff]  ;;  %v388_v59 = vmul.f32 %v51_v44, %v51_v44 }
  0x4a   :  { %242 = vmatpush.xpose.msra.mxu0 %v58_v60  ;;  %282 = vmatpush.xpose.msra.mxu2 %v60_v61  ;;  %v418_v60 = vld.sshfl [vmem:[#allocation1] sm:$0xff pattern:$0x73625140]  ;;  %v419_v61 = vld.sshfl [vmem:[#allocation1 + $0x8] sm:$0xff pattern:$0x73625140] }
  0x4b   :  { %262 = vmatpush.xpose.msra.mxu1 %v59_v0  ;;  %302 = vmatpush.xpose.msra.mxu3 %v61_v1  ;;  %v96_v0 = vld [vmem:[#allocation5 + $0x130] sm:$0xff]  ;;  %v390_v1 = vmul.f32 %v53_v45, %v53_v45 }
  0x4d   :  { %283 = vmatmul.f32.vlgmr.msra.gmra.mxu2 %v213_v33  ;;  %243 = vmatmul.f32.vlgmr.msra.gmra.mxu0 %v211_v35  ;;  %v62_v33 = vld [vmem:[#allocation5 + $0x20] sm:$0xff] }
  0x4e   :  { %307 = vmatpush.xpose.msrb.mxu0 %v182_v62  ;;  %347 = vmatpush.xpose.msrb.mxu2 %v184_v63  ;;  %v105_v62 = vld [vmem:[#allocation5 + $0x178] sm:$0xff]  ;;  %v94_v63 = vld [vmem:[#allocation5 + $0x120] sm:$0xff] }
  0x4f   :  { %327 = vmatpush.xpose.msrb.mxu1 %v183_v2  ;;  %367 = vmatpush.xpose.msrb.mxu3 %v185_v3  ;;  %v619_v2 = vld.sshfl [vmem:[#allocation1 + $0x20] sm:$0xff pattern:$0x73625140]  ;;  %v392_v3 = vmul.f32 %v55_v48, %v55_v48 }
  0x50   :  { %303 = vmatmul.f32.vlgmr.msra.gmra.mxu3 %v214_v37  ;;  %263 = vmatmul.f32.vlgmr.msra.gmra.mxu1 %v212_v41  ;;  %v65_v37 = vld [vmem:[#allocation5 + $0x38] sm:$0xff] }
  0x52   :  { %308 = vmatpush.xpose.msrb.mxu0 %v174_v4  ;;  %348 = vmatpush.xpose.msrb.mxu2 %v176_v5  ;;  %v217_v4 = vld.sshfl [vmem:[#allocation1 + $0x30] sm:$0xff pattern:$0x73625140]  ;;  %v394_v5 = vmul.f32 %v57_v49, %v57_v49 }
  0x53   :  { %328 = vmatpush.xpose.msrb.mxu1 %v175_v6  ;;  %368 = vmatpush.xpose.msrb.mxu3 %v177_v7  ;;  %v216_v6 = vld.sshfl [vmem:[#allocation1 + $0x28] sm:$0xff pattern:$0x73625140]  ;;  %v218_v7 = vld.sshfl [vmem:[#allocation1 + $0x38] sm:$0xff pattern:$0x73625140] }
  0x54   :  { %411 = vst [vmem:[#allocation1 + $0x20] ss:$4 sm:$0xff] %v388_v59 }
  0x55   :  { %413 = vst [vmem:[#allocation1 + $0x21] ss:$4 sm:$0xff] %v390_v1 }
  0x56   :  { %309 = vmatpush.xpose.msrb.mxu0 %v166_v8  ;;  %349 = vmatpush.xpose.msrb.mxu2 %v168_v9  ;;  %v434_v8 = vadd.f32 %v419_v61, %v418_v60  ;;  %v420_v9 = vld.sshfl [vmem:[#allocation1 + $0x10] sm:$0xff pattern:$0x73625140]  ;;  %415 = vst [vmem:[#allocation1 + $0x22] ss:$4 sm:$0xff] %v392_v3 }
  0x57   :  { %329 = vmatpush.xpose.msrb.mxu1 %v167_v10  ;;  %369 = vmatpush.xpose.msrb.mxu3 %v169_v11  ;;  %v95_v10 = vld [vmem:[#allocation5 + $0x128] sm:$0xff]  ;;  %v97_v11 = vld [vmem:[#allocation5 + $0x138] sm:$0xff]  ;;  %417 = vst [vmem:[#allocation1 + $0x23] ss:$4 sm:$0xff] %v394_v5 }
  0x5a   :  { %310 = vmatpush.xpose.msrb.mxu0 %v158_v12  ;;  %350 = vmatpush.xpose.msrb.mxu2 %v160_v13  ;;  %v86_v12 = vld [vmem:[#allocation5 + $0xe0] sm:$0xff]  ;;  %v88_v13 = vld [vmem:[#allocation5 + $0xf0] sm:$0xff] }
  0x5b   :  { %330 = vmatpush.xpose.msrb.mxu1 %v159_v14  ;;  %370 = vmatpush.xpose.msrb.mxu3 %v161_v15  ;;  %v435_v14 = vadd.f32 %v434_v8, %v420_v9  ;;  %v421_v15 = vld.sshfl [vmem:[#allocation1 + $0x18] sm:$0xff pattern:$0x73625140] }
  0x5d   :  { %v436_v20 = vadd.f32 %v435_v14, %v421_v15 }
  0x5e   :  { %311 = vmatpush.xpose.msrb.mxu0 %v150_v16  ;;  %351 = vmatpush.xpose.msrb.mxu2 %v152_v19  ;;  %v87_v16 = vld [vmem:[#allocation5 + $0xe8] sm:$0xff]  ;;  %v80_v19 = vld [vmem:[#allocation5 + $0xb0] sm:$0xff] }
  0x5f   :  { %331 = vmatpush.xpose.msrb.mxu1 %v151_v22  ;;  %371 = vmatpush.xpose.msrb.mxu3 %v153_v23  ;;  %v81_v22 = vld [vmem:[#allocation5 + $0xb8] sm:$0xff]  ;;  %v425_v32 = vld.sshfl [vmem:[#allocation1 + $0x38] sm:$0xff pattern:$0x73625140] }
  0x60   :  { %v422_v23 = vld.sshfl [vmem:[#allocation1 + $0x20] sm:$0xff pattern:$0x73625140] }
  0x62   :  { %312 = vmatpush.xpose.msrb.mxu0 %v142_v24  ;;  %352 = vmatpush.xpose.msrb.mxu2 %v144_v25  ;;  %v423_v24 = vld.sshfl [vmem:[#allocation1 + $0x28] sm:$0xff pattern:$0x73625140] }
  0x63   :  { %332 = vmatpush.xpose.msrb.mxu1 %v143_v26  ;;  %372 = vmatpush.xpose.msrb.mxu3 %v145_v27  ;;  %v70_v25 = vld [vmem:[#allocation5 + $0x60] sm:$0xff]  ;;  %v72_v26 = vld [vmem:[#allocation5 + $0x70] sm:$0xff]  ;;  %v437_v27 = vadd.f32 %v436_v20, %v422_v23 }
  0x66   :  { %313 = vmatpush.xpose.msrb.mxu0 %v134_v28  ;;  %353 = vmatpush.xpose.msrb.mxu2 %v136_v29  ;;  %v424_v28 = vld.sshfl [vmem:[#allocation1 + $0x30] sm:$0xff pattern:$0x73625140] }
  0x67   :  { %333 = vmatpush.xpose.msrb.mxu1 %v135_v30  ;;  %373 = vmatpush.xpose.msrb.mxu3 %v137_v31  ;;  %v71_v29 = vld [vmem:[#allocation5 + $0x68] sm:$0xff]  ;;  %v73_v30 = vld [vmem:[#allocation5 + $0x78] sm:$0xff]  ;;  %v438_v31 = vadd.f32 %v437_v27, %v423_v24 }
  0x69   :  { %v439_v35 = vadd.f32 %v438_v31, %v424_v28 }
  0x6a   :  { %314 = vmatpush.xpose.msrb.mxu0 %v126_v38  ;;  %354 = vmatpush.xpose.msrb.mxu2 %v128_v39 }
  0x6b   :  { %334 = vmatpush.xpose.msrb.mxu1 %v127_v42  ;;  %374 = vmatpush.xpose.msrb.mxu3 %v129_v43  ;;  %v440_v38 = vadd.f32 %v439_v35, %v425_v32 }
  0x6d   :  { %441 = vadd.xlane.f32.xlu0 %v440_v38 }
  0x6e   :  { %315 = vmatpush.xpose.msrb.mxu0 %v118_v46  ;;  %355 = vmatpush.xpose.msrb.mxu2 %v120_v47 }
  0x6f   :  { %335 = vmatpush.xpose.msrb.mxu1 %v119_v50  ;;  %375 = vmatpush.xpose.msrb.mxu3 %v121_v51 }
  0x72   :  { %316 = vmatpush.xpose.msrb.mxu0 %v110_v52  ;;  %356 = vmatpush.xpose.msrb.mxu2 %v112_v53 }
  0x73   :  { %336 = vmatpush.xpose.msrb.mxu1 %v111_v54  ;;  %376 = vmatpush.xpose.msrb.mxu3 %v113_v55 }
  0x76   :  { %317 = vmatpush.xpose.msrb.mxu0 %v102_v56  ;;  %357 = vmatpush.xpose.msrb.mxu2 %v104_v57  ;;  %v500_v57 = vld [vmem:[%s634_s3] ss:$0 sm:$0xff] }
  0x77   :  { %337 = vmatpush.xpose.msrb.mxu1 %v103_v58  ;;  %377 = vmatpush.xpose.msrb.mxu3 %v105_v62 }
  0x7a   :  { %318 = vmatpush.xpose.msrb.mxu0 %v94_v63  ;;  %358 = vmatpush.xpose.msrb.mxu2 %v96_v0  ;;  %v186_v63 = vld [vmem:[%s633_s2] sm:$0x1] }
  0x7b   :  { %338 = vmatpush.xpose.msrb.mxu1 %v95_v10  ;;  %378 = vmatpush.xpose.msrb.mxu3 %v97_v11 }
  0x7e   :  { %319 = vmatpush.xpose.msrb.mxu0 %v86_v12  ;;  %359 = vmatpush.xpose.msrb.mxu2 %v88_v13 }
  0x7f   :  { %339 = vmatpush.xpose.msrb.mxu1 %v87_v16  ;;  %379 = vmatpush.xpose.msrb.mxu3 %v89_v17 }
  0x82   :  { %320 = vmatpush.xpose.msrb.mxu0 %v78_v18  ;;  %360 = vmatpush.xpose.msrb.mxu2 %v80_v19 }
  0x83   :  { %340 = vmatpush.xpose.msrb.mxu1 %v79_v21  ;;  %380 = vmatpush.xpose.msrb.mxu3 %v81_v22 }
  0x86   :  { %321 = vmatpush.xpose.msrb.mxu0 %v70_v25  ;;  %361 = vmatpush.xpose.msrb.mxu2 %v72_v26 }
  0x87   :  { %341 = vmatpush.xpose.msrb.mxu1 %v71_v29  ;;  %381 = vmatpush.xpose.msrb.mxu3 %v73_v30 }
  0x8a   :  { %322 = vmatpush.xpose.msrb.mxu0 %v62_v33  ;;  %362 = vmatpush.xpose.msrb.mxu2 %v64_v34 }
  0x8b   :  { %342 = vmatpush.xpose.msrb.mxu1 %v63_v36  ;;  %382 = vmatpush.xpose.msrb.mxu3 %v65_v37 }
  0x8d   :  { %323 = vmatmul.f32.vlgmr.msrb.gmra.mxu0 %v619_v2  ;;  %363 = vmatmul.f32.vlgmr.msrb.gmra.mxu2 %v217_v4 }
  0x8e   :  { %343 = vmatmul.f32.vlgmr.msrb.gmra.mxu1 %v216_v6  ;;  %383 = vmatmul.f32.vlgmr.msrb.gmra.mxu3 %v218_v7 }
  0xca   :  { %v244_v40 = vpop.f32.mrf.mxu0 }
  0xcd   :  { %v264_v39 = vpop.f32.mrf.mxu1 }
  0xce   :  { %v265_v41 = vadd.f32 %v264_v39, %v244_v40 }
  0xd0   :  { %v284_v42 = vpop.f32.mrf.mxu2 }
  0xd1   :  { %v285_v43 = vadd.f32 %v284_v42, %v265_v41 }
  0xd3   :  { %v304_v44 = vpop.f32.mrf.mxu3 }
  0xd4   :  { %v305_v45 = vadd.f32 %v304_v44, %v285_v43 }
  0xe0   :  { %v442_v51 = vpop.xlane.xlu0 %441 }
  0xe1   :  { %v444_v55 = vmul.f32 -0.0009765625, %v442_v51 }
 0x10a   :  { %v324_v46 = vpop.f32.mrf.mxu0 }
 0x10b   :  { %v325_v47 = vadd.f32 %v324_v46, %v305_v45  ;;  %v344_v48 = vpop.f32.mrf.mxu1 }
 0x10d   :  { %v345_v49 = vadd.f32 %v344_v48, %v325_v47 }
 0x110   :  { %v364_v50 = vpop.f32.mrf.mxu2 }
 0x111   :  { %v365_v52 = vadd.f32 %v364_v50, %v345_v49  ;;  %v384_v53 = vpop.f32.mrf.mxu3 }
 0x113   :  { %v385_v54 = vadd.f32 %v384_v53, %v365_v52 }
 0x115   :  { %v443_v56 = vmul.f32 0.001953125, %v385_v54 }
 0x117   :  { %v445_v58 = vadd.f32 %v444_v55, %v443_v56 }
 0x119   :  { %v449_v59 = vadd.f32 %v500_v57, %v445_v58 }
 0x11b   :  { %v450_v60 = vmin.f32 %v449_v59, 0.0 }
 0x11d   :  { %v451_v61 = vmul.f32 1.442695, %v450_v60 }
 0x11f   :  { %501 = vpow2.f32 %v451_v61 }
 0x125   :  { %v502_v62 = vpop.eup %501 }
 0x126   :  { %468 = vmatpush.xpose.msra.mxu0 %v502_v62 }
 0x129   :  { %469 = vmatmul.f32.vlgmr.msra.gmra.mxu0 %v186_v63 }
 0x1a6   :  { %v470_v0 = vpop.f32.mrf.mxu0 }
 0x1a7   :  { %v471_v1 = vadd.f32 0.67965436, %v470_v0 }
 0x1a9   :  { %474 = vst.msk [vmem:[#allocation7] sm:$0x1] %vm473_vm0, %v471_v1 }
 0x1aa   :  { %485 = dma.vmem_to_hbm [thread:$0]  %s481_s6, 16, %s483_s9, [#allocation4]  }
 0x1ab   :  { %579 = dma.done.wait [#allocation4], 16  }
 0x1ac   :  { %580 = vsyncadd [#allocation4], 4294967280 }
 0x1ad   :  { %490 = vsyncpa [#allocation3], 1 }
 0x1ae   :  { %491 = vsyncpa [#allocation6], 1 }
 0x1af   :  { %492 = vsyncpa [#allocation4], 1 }

</bundles_post_ra>
